<compile_context>
chip_gen: v6e
topology: v6e:2x2x1
jax: 0.10.0
libtpu: 0.0.40
codegen_flags: <defaults>
</compile_context>

<pallas_src>
import math
from functools import partial

import jax
import jax.numpy as jnp
from jax import lax
from jax.experimental import pallas as pl
from jax.experimental.pallas import tpu as pltpu


def _fdn_kernel(x_ref, f_ref, w_ref, b_ref, avg_ref, m_ref, o_ref, *, W: int):
    # x_ref:   (C,  H*W)   input for this batch element (channels on sublanes, spatial on lanes)
    # f_ref:   (Cf, H*W)   conditioning features (unpadded; conv halo handled in-kernel)
    # w_ref:   (2C, 9*Cf)  [scale; shift] conv weights, K axis tap-major: k*Cf + ci, k = ky*3+kx
    # b_ref:   (2C, 1)     [scale_bias + 1; shift_bias]
    # avg_ref: (C,  C)     group-average matrix: 1/(Cg*HW) where same group, else 0
    # m_ref:   (9,  H*W)   per-tap border-validity masks (center tap row is all ones)
    # o_ref:   (C,  H*W)
    C, HW = x_ref.shape

    x = x_ref[...].astype(jnp.float32)                           # (C, HW)

    # ---- GroupNorm (affine=False, eps=1e-5): one-pass stats via lane reductions ----
    ch_sum = jnp.sum(x, axis=1, keepdims=True)                   # (C, 1)
    ch_sq = jnp.sum(x * x, axis=1, keepdims=True)                # (C, 1)
    stats = jnp.concatenate([ch_sum, ch_sq], axis=1)             # (C, 2)
    # avg @ stats both reduces within each group and broadcasts back to every channel.
    g = jnp.dot(avg_ref[...].astype(jnp.float32), stats,
                preferred_element_type=jnp.float32)              # (C, 2)
    mean = g[:, 0:1]
    ex2 = g[:, 1:2]
    var = jnp.maximum(ex2 - mean * mean, 0.0)
    x_norm = (x - mean) * lax.rsqrt(var + 1e-5)                  # (C, HW)

    # ---- fused scale/shift 3x3 conv: single (2C, 9*Cf) x (9*Cf, HW) matmul ----
    f = f_ref[...].astype(jnp.float32)                           # (Cf, HW), cast once
    taps = []
    k = 0
    for dy in (-1, 0, 1):
        for dx in (-1, 0, 1):
            if dy == 0 and dx == 0:
                taps.append(f)                                   # center: mask is all ones
            else:
                d = dy * W + dx
                # shifted[p] = f[(p + d) mod HW]; out-of-image taps zeroed by mask row k
                shifted = pltpu.roll(f, (-d) % HW, axis=1)
                taps.append(shifted * m_ref[k:k + 1, :].astype(jnp.float32))
            k += 1
    patches = jnp.concatenate(taps, axis=0)                      # (9*Cf, HW)

    z = jnp.dot(w_ref[...].astype(jnp.float32), patches,
                preferred_element_type=jnp.float32)              # (2C, HW)
    z = z + b_ref[...].astype(jnp.float32)
    scale_p1 = z[:C, :]          # == scale + 1  (the "+1" is folded into the bias)
    shift = z[C:, :]

    y = x_norm * scale_p1 + shift
    y = y * jax.nn.sigmoid(y)                                    # SiLU
    o_ref[...] = y.astype(o_ref.dtype)


def feature_denormalization(x_nchw, feat_nchw,
                            scale_w, scale_b, shift_w, shift_b,
                            num_groups: int = 8):
    """x_nchw: (B, C, H, W); feat_nchw: (B, Cf, H, W); conv weights OIHW."""
    B, C, H, W = x_nchw.shape
    Cf = feat_nchw.shape[1]
    HW = H * W
    Cg = C // num_groups

    # NCHW stays: flattening contiguous (H, W) -> H*W is free (no transpose, no pad).
    x = x_nchw.reshape(B, C, HW)
    f = feat_nchw.reshape(B, Cf, HW)

    # OIHW -> (Cout, kH, kW, Cin) -> (Cout, 9*Cf); scale & shift stacked along Cout.
    w = jnp.concatenate([scale_w, shift_w], axis=0)                    # (2C, Cf, 3, 3)
    w = jnp.transpose(w, (0, 2, 3, 1)).reshape(2 * C, 9 * Cf).astype(jnp.float32)
    # Fold the "+1" of  x_norm * (scale + 1)  into the scale bias.
    b = jnp.concatenate([scale_b + 1.0, shift_b], axis=0).reshape(2 * C, 1).astype(jnp.float32)

    # Group-average matrix (precomputed once on host; resident in VMEM across the grid).
    row_g = jnp.arange(C)[:, None] // Cg
    col_g = jnp.arange(C)[None, :] // Cg
    avg = jnp.where(row_g == col_g, 1.0 / float(Cg * HW), 0.0).astype(jnp.float32)  # (C, C)

    # Per-tap border-validity masks (precomputed once; removes per-step iota/div/compare).
    pos = jnp.arange(HW)
    yy = pos // W
    xx = pos % W
    masks = []
    for dy in (-1, 0, 1):
        for dx in (-1, 0, 1):
            valid = ((yy + dy >= 0) & (yy + dy < H) &
                     (xx + dx >= 0) & (xx + dx < W))
            masks.append(valid.astype(jnp.float32))
    tap_mask = jnp.stack(masks, axis=0)                                # (9, HW)

    kernel = partial(_fdn_kernel, W=W)

    out = pl.pallas_call(
        kernel,
        out_shape=jax.ShapeDtypeStruct((B, C, HW), x_nchw.dtype),
        grid=(B,),
        in_specs=[
            pl.BlockSpec((None, C, HW), lambda bb: (bb, 0, 0)),
            pl.BlockSpec((None, Cf, HW), lambda bb: (bb, 0, 0)),
            pl.BlockSpec((2 * C, 9 * Cf), lambda bb: (0, 0)),
            pl.BlockSpec((2 * C, 1), lambda bb: (0, 0)),
            pl.BlockSpec((C, C), lambda bb: (0, 0)),
            pl.BlockSpec((9, HW), lambda bb: (0, 0)),
        ],
        out_specs=pl.BlockSpec((None, C, HW), lambda bb: (bb, 0, 0)),
        compiler_params=pltpu.CompilerParams(
            dimension_semantics=("parallel",)),   # batch axis parallel (v7x megacore)
    )(x, f, w, b, avg, tap_mask)

    return out.reshape(B, C, H, W)


def _reference(x, feat, sw, sb, tw, tb, num_groups):
    """Pure-JAX reference matching PyTorch semantics (NCHW)."""
    B, C, H, W = x.shape
    xg = x.reshape(B, num_groups, -1)
    mean = xg.mean(axis=-1, keepdims=True)
    var = ((xg - mean) ** 2).mean(axis=-1, keepdims=True)
    xn = ((xg - mean) / jnp.sqrt(var + 1e-5)).reshape(B, C, H, W)

    def conv(f, w, b):
        y = lax.conv_general_dilated(
            f, w, window_strides=(1, 1), padding="SAME",
            dimension_numbers=("NCHW", "OIHW", "NCHW"))
        return y + b[None, :, None, None]

    scale = conv(feat, sw, sb)
    shift = conv(feat, tw, tb)
    y = xn * (scale + 1.0) + shift
    return y * jax.nn.sigmoid(y)


if __name__ == "__main__":
    batch = 2
    input_dim = 16       # x channels (divisible by num_groups)
    feature_dim = 8      # feature channels
    spatial = 16
    num_groups = 8

    key = jax.random.PRNGKey(0)
    k1, k2, k3, k4, k5, k6 = jax.random.split(key, 6)

    x = jax.random.normal(k1, (batch, input_dim, spatial, spatial), jnp.float32)
    features = jax.random.normal(
        k2, (batch, feature_dim, spatial, spatial), jnp.float32)

    # Deterministic Conv2d parameter init (PyTorch default: U(-1/sqrt(fan_in), +)).
    fan_in = feature_dim * 3 * 3
    bound = 1.0 / math.sqrt(fan_in)
    scale_w = jax.random.uniform(
        k3, (input_dim, feature_dim, 3, 3), jnp.float32, -bound, bound)
    scale_b = jax.random.uniform(k4, (input_dim,), jnp.float32, -bound, bound)
    shift_w = jax.random.uniform(
        k5, (input_dim, feature_dim, 3, 3), jnp.float32, -bound, bound)
    shift_b = jax.random.uniform(k6, (input_dim,), jnp.float32, -bound, bound)

    out = feature_denormalization(
        x, features, scale_w, scale_b, shift_w, shift_b, num_groups)
    out = jax.block_until_ready(out)

    ref = _reference(x, features, scale_w, scale_b, shift_w, shift_b, num_groups)
    assert out.shape == ref.shape == (batch, input_dim, spatial, spatial)
    assert jnp.allclose(out, ref, atol=1e-4, rtol=1e-4), (
        float(jnp.max(jnp.abs(out - ref))))

    print("KERNEL_OK")
</pallas_src>

<mosaic_0001>
module attributes {stable_mosaic.version = 11 : i64} {
  func.func @_fdn_kernel(%arg0: i32, %arg1: memref<1x16x256xf32, #tpu.memory_space<vmem>>, %arg2: memref<1x8x256xf32, #tpu.memory_space<vmem>>, %arg3: memref<32x72xf32, #tpu.memory_space<vmem>>, %arg4: memref<32x1xf32, #tpu.memory_space<vmem>>, %arg5: memref<16x16xf32, #tpu.memory_space<vmem>>, %arg6: memref<9x256xf32, #tpu.memory_space<vmem>>, %arg7: memref<1x16x256xf32, #tpu.memory_space<vmem>>) attributes {dimension_semantics = [#tpu.dimension_semantics<parallel>], iteration_bounds = array<i64: 2>, scalar_prefetch = 0 : i64, scratch_operands = 0 : i64, tpu.core_type = #tpu.core_type<tc>, window_params = [{transform_indices = @transform_0, window_bounds = array<i64: 1, 16, 256>}, {transform_indices = @transform_1, window_bounds = array<i64: 1, 8, 256>}, {pipeline_mode = #tpu.pipeline_mode<synchronous>, transform_indices = @transform_2, window_bounds = array<i64: 32, 72>}, {pipeline_mode = #tpu.pipeline_mode<synchronous>, transform_indices = @transform_3, window_bounds = array<i64: 32, 1>}, {pipeline_mode = #tpu.pipeline_mode<synchronous>, transform_indices = @transform_4, window_bounds = array<i64: 16, 16>}, {pipeline_mode = #tpu.pipeline_mode<synchronous>, transform_indices = @transform_5, window_bounds = array<i64: 9, 256>}, {transform_indices = @transform_6, window_bounds = array<i64: 1, 16, 256>}]} {
    %c0 = arith.constant 0 : index
    %c0_0 = arith.constant 0 : index
    %c0_1 = arith.constant 0 : index
    %0 = vector.load %arg1[%c0, %c0_0, %c0_1] : memref<1x16x256xf32, #tpu.memory_space<vmem>>, vector<1x16x256xf32>
    %1 = vector.shape_cast %0 : vector<1x16x256xf32> to vector<16x256xf32>
    %cst = arith.constant dense<0.000000e+00> : vector<16xf32>
    %2 = vector.multi_reduction <add>, %1, %cst [1] : vector<16x256xf32> to vector<16xf32>
    %3 = vector.shape_cast %2 : vector<16xf32> to vector<16x1xf32>
    %4 = arith.mulf %1, %1 : vector<16x256xf32>
    %cst_2 = arith.constant dense<0.000000e+00> : vector<16xf32>
    %5 = vector.multi_reduction <add>, %4, %cst_2 [1] : vector<16x256xf32> to vector<16xf32>
    %6 = vector.shape_cast %5 : vector<16xf32> to vector<16x1xf32>
    %7 = tpu.concatenate %3, %6 in 1 : vector<16x1xf32>, vector<16x1xf32> -> vector<16x2xf32>
    %c0_3 = arith.constant 0 : index
    %c0_4 = arith.constant 0 : index
    %8 = vector.load %arg5[%c0_3, %c0_4] : memref<16x16xf32, #tpu.memory_space<vmem>>, vector<16x16xf32>
    %cst_5 = arith.constant dense<0.000000e+00> : vector<16x2xf32>
    %9 = tpu.matmul %8, %7, %cst_5 {dimension_numbers = #tpu.dot_dimension_numbers<[1], [0], [0], [1], [0, 0, 1, 1], [], []>} : vector<16x16xf32>, vector<16x2xf32>, vector<16x2xf32> -> vector<16x2xf32>
    %10 = vector.extract_strided_slice %9 {offsets = [0, 0], sizes = [16, 1], strides = [1, 1]} : vector<16x2xf32> to vector<16x1xf32>
    %11 = vector.extract_strided_slice %9 {offsets = [0, 1], sizes = [16, 1], strides = [1, 1]} : vector<16x2xf32> to vector<16x1xf32>
    %12 = arith.mulf %10, %10 : vector<16x1xf32>
    %13 = arith.subf %11, %12 : vector<16x1xf32>
    %cst_6 = arith.constant 0.000000e+00 : f32
    %14 = vector.broadcast %cst_6 : f32 to vector<16x1xf32>
    %15 = arith.maximumf %13, %14 : vector<16x1xf32>
    %16 = vector.broadcast %10 : vector<16x1xf32> to vector<16x256xf32>
    %17 = arith.subf %1, %16 : vector<16x256xf32>
    %cst_7 = arith.constant 9.99999974E-6 : f32
    %18 = vector.broadcast %cst_7 : f32 to vector<16x1xf32>
    %19 = arith.addf %15, %18 : vector<16x1xf32>
    %20 = math.rsqrt %19 : vector<16x1xf32>
    %21 = vector.broadcast %20 : vector<16x1xf32> to vector<16x256xf32>
    %22 = arith.mulf %17, %21 : vector<16x256xf32>
    %c0_8 = arith.constant 0 : index
    %c0_9 = arith.constant 0 : index
    %c0_10 = arith.constant 0 : index
    %23 = vector.load %arg2[%c0_8, %c0_9, %c0_10] : memref<1x8x256xf32, #tpu.memory_space<vmem>>, vector<1x8x256xf32>
    %24 = vector.shape_cast %23 : vector<1x8x256xf32> to vector<8x256xf32>
    %c17_i32 = arith.constant 17 : i32
    %25 = tpu.dynamic_rotate %24 by %c17_i32 dim 1 : vector<8x256xf32>, i32 -> vector<8x256xf32>
    %c0_11 = arith.constant 0 : index
    %c0_12 = arith.constant 0 : index
    %26 = vector.load %arg6[%c0_11, %c0_12] : memref<9x256xf32, #tpu.memory_space<vmem>>, vector<1x256xf32>
    %27 = vector.broadcast %26 : vector<1x256xf32> to vector<8x256xf32>
    %28 = arith.mulf %25, %27 : vector<8x256xf32>
    %c16_i32 = arith.constant 16 : i32
    %29 = tpu.dynamic_rotate %24 by %c16_i32 dim 1 : vector<8x256xf32>, i32 -> vector<8x256xf32>
    %c1 = arith.constant 1 : index
    %c0_13 = arith.constant 0 : index
    %30 = vector.load %arg6[%c1, %c0_13] : memref<9x256xf32, #tpu.memory_space<vmem>>, vector<1x256xf32>
    %31 = vector.broadcast %30 : vector<1x256xf32> to vector<8x256xf32>
    %32 = arith.mulf %29, %31 : vector<8x256xf32>
    %c15_i32 = arith.constant 15 : i32
    %33 = tpu.dynamic_rotate %24 by %c15_i32 dim 1 : vector<8x256xf32>, i32 -> vector<8x256xf32>
    %c2 = arith.constant 2 : index
    %c0_14 = arith.constant 0 : index
    %34 = vector.load %arg6[%c2, %c0_14] : memref<9x256xf32, #tpu.memory_space<vmem>>, vector<1x256xf32>
    %35 = vector.broadcast %34 : vector<1x256xf32> to vector<8x256xf32>
    %36 = arith.mulf %33, %35 : vector<8x256xf32>
    %c1_i32 = arith.constant 1 : i32
    %37 = tpu.dynamic_rotate %24 by %c1_i32 dim 1 : vector<8x256xf32>, i32 -> vector<8x256xf32>
    %c3 = arith.constant 3 : index
    %c0_15 = arith.constant 0 : index
    %38 = vector.load %arg6[%c3, %c0_15] : memref<9x256xf32, #tpu.memory_space<vmem>>, vector<1x256xf32>
    %39 = vector.broadcast %38 : vector<1x256xf32> to vector<8x256xf32>
    %40 = arith.mulf %37, %39 : vector<8x256xf32>
    %c255_i32 = arith.constant 255 : i32
    %41 = tpu.dynamic_rotate %24 by %c255_i32 dim 1 : vector<8x256xf32>, i32 -> vector<8x256xf32>
    %c5 = arith.constant 5 : index
    %c0_16 = arith.constant 0 : index
    %42 = vector.load %arg6[%c5, %c0_16] : memref<9x256xf32, #tpu.memory_space<vmem>>, vector<1x256xf32>
    %43 = vector.broadcast %42 : vector<1x256xf32> to vector<8x256xf32>
    %44 = arith.mulf %41, %43 : vector<8x256xf32>
    %c241_i32 = arith.constant 241 : i32
    %45 = tpu.dynamic_rotate %24 by %c241_i32 dim 1 : vector<8x256xf32>, i32 -> vector<8x256xf32>
    %c6 = arith.constant 6 : index
    %c0_17 = arith.constant 0 : index
    %46 = vector.load %arg6[%c6, %c0_17] : memref<9x256xf32, #tpu.memory_space<vmem>>, vector<1x256xf32>
    %47 = vector.broadcast %46 : vector<1x256xf32> to vector<8x256xf32>
    %48 = arith.mulf %45, %47 : vector<8x256xf32>
    %c240_i32 = arith.constant 240 : i32
    %49 = tpu.dynamic_rotate %24 by %c240_i32 dim 1 : vector<8x256xf32>, i32 -> vector<8x256xf32>
    %c7 = arith.constant 7 : index
    %c0_18 = arith.constant 0 : index
    %50 = vector.load %arg6[%c7, %c0_18] : memref<9x256xf32, #tpu.memory_space<vmem>>, vector<1x256xf32>
    %51 = vector.broadcast %50 : vector<1x256xf32> to vector<8x256xf32>
    %52 = arith.mulf %49, %51 : vector<8x256xf32>
    %c239_i32 = arith.constant 239 : i32
    %53 = tpu.dynamic_rotate %24 by %c239_i32 dim 1 : vector<8x256xf32>, i32 -> vector<8x256xf32>
    %c8 = arith.constant 8 : index
    %c0_19 = arith.constant 0 : index
    %54 = vector.load %arg6[%c8, %c0_19] : memref<9x256xf32, #tpu.memory_space<vmem>>, vector<1x256xf32>
    %55 = vector.broadcast %54 : vector<1x256xf32> to vector<8x256xf32>
    %56 = arith.mulf %53, %55 : vector<8x256xf32>
    %57 = tpu.concatenate %28, %32, %36, %40, %24, %44, %48, %52, %56 in 0 : vector<8x256xf32>, vector<8x256xf32>, vector<8x256xf32>, vector<8x256xf32>, vector<8x256xf32>, vector<8x256xf32>, vector<8x256xf32>, vector<8x256xf32>, vector<8x256xf32> -> vector<72x256xf32>
    %c0_20 = arith.constant 0 : index
    %c0_21 = arith.constant 0 : index
    %58 = vector.load %arg3[%c0_20, %c0_21] : memref<32x72xf32, #tpu.memory_space<vmem>>, vector<32x72xf32>
    %cst_22 = arith.constant dense<0.000000e+00> : vector<32x256xf32>
    %59 = tpu.matmul %58, %57, %cst_22 {dimension_numbers = #tpu.dot_dimension_numbers<[1], [0], [0], [1], [0, 0, 1, 1], [], []>} : vector<32x72xf32>, vector<72x256xf32>, vector<32x256xf32> -> vector<32x256xf32>
    %c0_23 = arith.constant 0 : index
    %c0_24 = arith.constant 0 : index
    %60 = vector.load %arg4[%c0_23, %c0_24] : memref<32x1xf32, #tpu.memory_space<vmem>>, vector<32x1xf32>
    %61 = vector.broadcast %60 : vector<32x1xf32> to vector<32x256xf32>
    %62 = arith.addf %59, %61 : vector<32x256xf32>
    %63 = vector.extract_strided_slice %62 {offsets = [0, 0], sizes = [16, 256], strides = [1, 1]} : vector<32x256xf32> to vector<16x256xf32>
    %64 = vector.extract_strided_slice %62 {offsets = [16, 0], sizes = [16, 256], strides = [1, 1]} : vector<32x256xf32> to vector<16x256xf32>
    %65 = arith.mulf %22, %63 : vector<16x256xf32>
    %66 = arith.addf %65, %64 : vector<16x256xf32>
    %67 = arith.negf %66 : vector<16x256xf32>
    %68 = math.exp %67 : vector<16x256xf32>
    %cst_25 = arith.constant 1.000000e+00 : f32
    %69 = vector.broadcast %cst_25 : f32 to vector<16x256xf32>
    %70 = arith.addf %69, %68 : vector<16x256xf32>
    %71 = arith.divf %69, %70 : vector<16x256xf32>
    %72 = arith.mulf %66, %71 : vector<16x256xf32>
    %c0_26 = arith.constant 0 : index
    %c0_27 = arith.constant 0 : index
    %c0_28 = arith.constant 0 : index
    %73 = vector.load %arg7[%c0_26, %c0_27, %c0_28] : memref<1x16x256xf32, #tpu.memory_space<vmem>>, vector<1x16x256xf32>
    %74 = vector.shape_cast %73 : vector<1x16x256xf32> to vector<16x256xf32>
    %75 = vector.shape_cast %72 : vector<16x256xf32> to vector<1x16x256xf32>
    tpu.vector_store %arg7[%c0_26, %c0_27, %c0_28], %75 {strides = array<i32>} : memref<1x16x256xf32, #tpu.memory_space<vmem>>, vector<1x16x256xf32>,
    return
  }
  func.func @transform_0(%arg0: i32) -> (i32, i32, i32) {
    %c0_i32 = arith.constant 0 : i32
    %c0_i32_0 = arith.constant 0 : i32
    %c0_i32_1 = arith.constant 0 : i32
    return %arg0, %c0_i32, %c0_i32_0 : i32, i32, i32
  }
  func.func @transform_1(%arg0: i32) -> (i32, i32, i32) {
    %c0_i32 = arith.constant 0 : i32
    %c0_i32_0 = arith.constant 0 : i32
    %c0_i32_1 = arith.constant 0 : i32
    return %arg0, %c0_i32, %c0_i32_0 : i32, i32, i32
  }
  func.func @transform_2(%arg0: i32) -> (i32, i32) {
    %c0_i32 = arith.constant 0 : i32
    %c0_i32_0 = arith.constant 0 : i32
    %c0_i32_1 = arith.constant 0 : i32
    return %c0_i32, %c0_i32_0 : i32, i32
  }
  func.func @transform_3(%arg0: i32) -> (i32, i32) {
    %c0_i32 = arith.constant 0 : i32
    %c0_i32_0 = arith.constant 0 : i32
    %c0_i32_1 = arith.constant 0 : i32
    return %c0_i32, %c0_i32_0 : i32, i32
  }
  func.func @transform_4(%arg0: i32) -> (i32, i32) {
    %c0_i32 = arith.constant 0 : i32
    %c0_i32_0 = arith.constant 0 : i32
    %c0_i32_1 = arith.constant 0 : i32
    return %c0_i32, %c0_i32_0 : i32, i32
  }
  func.func @transform_5(%arg0: i32) -> (i32, i32) {
    %c0_i32 = arith.constant 0 : i32
    %c0_i32_0 = arith.constant 0 : i32
    %c0_i32_1 = arith.constant 0 : i32
    return %c0_i32, %c0_i32_0 : i32, i32
  }
  func.func @transform_6(%arg0: i32) -> (i32, i32, i32) {
    %c0_i32 = arith.constant 0 : i32
    %c0_i32_0 = arith.constant 0 : i32
    %c0_i32_1 = arith.constant 0 : i32
    return %arg0, %c0_i32, %c0_i32_0 : i32, i32, i32
  }
}

</mosaic_0001>

<bundles_post_ra>
// kernel: tpu_custom_call.1
= control target key start
LH: loop header
LB: loop body
LE: loop exit
PB: predicated region body
PF: predicated region fallthrough
CT: control target
= control target key end

     0   :  { %11 = vsyncpa [#allocation3], 0  ;;  %s1705_s0 = inlined_call_operand.hbm [shape: f32[2,16,256], index: 0, kind: input, shape index: {}]   ;;  %s1706_s1 = inlined_call_operand.vmem [shape: f32[2,8,256], index: 1, kind: input, shape index: {}]   ;;  %s1707_s2 = inlined_call_operand.hbm [shape: f32[32,72], index: 2, kind: input, shape index: {}]   ;;  %s1708_s3 = inlined_call_operand.vmem [shape: f32[32,1], index: 3, kind: input, shape index: {}]   ;;  %s1709_s4 = inlined_call_operand.hbm [shape: f32[16,16], index: 4, kind: input, shape index: {}]   ;;  %s1710_s5 = inlined_call_operand.hbm [shape: f32[9,256], index: 5, kind: input, shape index: {}]   ;;  %s1711_s6 = inlined_call_operand.hbm [shape: f32[2,16,256], index: 6, kind: output, shape index: {}]  }
   0x1   :  { %13 = vsyncpa [#allocation3 + $0x1], 0 }
   0x2   :  { %14 = vsyncpa [#allocation6], 0 }
   0x3   :  { %15 = vsyncpa [#allocation9], 0 }
   0x4   :  { %16 = vsyncpa [#allocation4], 0 }
   0x5   :  { %18 = vsyncpa [#allocation4 + $0x1], 0  ;;  %s1383_s21 = smov 0   ;;  %s1385_s22 = smov 0  }
   0x6   :  { %s1387_s23 = smov 0   ;;  %s1389_s24 = smov 0  }
   0x7 LB: > { %s1404_s25 = sadd.s32 4294967295, %s1325_s24   ;;  %s964_s26 = sadd.s32 4294967294, %s1325_s24   ;;  %s1325_s24 = sphi %s1389_s24, %s1739_s24   ;;  %s1321_s23 = sphi %s1387_s23, %s1738_s23   ;;  %s1317_s22 = sphi %s1385_s22, %s1737_s22   ;;  %s1313_s21 = sphi %s1383_s21, %s1736_s21  }
   0x8   : > { %p44_p0 = scmp.ne.s32.totalorder %s1317_s22, %s1313_s21  ;;  %p1712_p1 = scmp.eq.s32.totalorder %s1404_s25, 0 }
   0x9   : > { %p184_p3 = scmp.eq.s32.totalorder %s964_s26, 1  ;;  %p965_p5 = scmp.ge.s32.totalorder %s1325_s24, 1 }
   0xa   : > { %p1413_p4 = por %p1712_p1, %p44_p0  ;;  %p191_p7 = scmp.lt.s32.totalorder %s1325_s24, 3 }
   0xb   : > { %p1418_p6 = por %p184_p3, %p44_p0  ;;  %s1327_s30 = smov [#allocation5]  }
   0xc   : > { %s1718_s27 = scalar_select %p1413_p4, 1, 0 }
   0xd   : > { %s1719_s28 = scalar_select %p1418_p6, 1, 0 }
   0xe   : > { %p1423_p8 = pnand %p965_p5, %p191_p7  ;;  %s203_s7 = sshll.u32 %s1327_s30, 4  ;;  %s204_s7 = int_to_ptr.vmem [resolvable:$true] %s203_s7 }
   0xf   : > { %s1328_s9 = smov [#allocation7]   ;;  %s1329_s11 = smov [#allocation8]  }
  0x10   : > { %s1720_s29 = scalar_select %p1423_p8, 1, 0 }
  0x11   : > { %p1044_p9 = pneg %p1423_p8  ;;  %s219_s10 = sshll.u32 %s1328_s9, 4  ;;  %s220_s10 = int_to_ptr.vmem [resolvable:$true] %s219_s10 }
  0x12   : > { %s232_s12 = sshll.u32 %s1329_s11, 4  ;;  %s1158_s13 = scalar_lea.vmem %s204_s7, 512  ;;  %s233_s12 = int_to_ptr.vmem [resolvable:$true] %s232_s12 }
  0x13   : > { %p1432_p11 = pnand %p1044_p9, %p1712_p1  ;;  %p1159_p13 = scmp.ne.s32.totalorder %s204_s7, %s1158_s13 }
  0x14   : > { %p1166_p5 = scmp.lt.s32.totalorder %s204_s7, %s204_s7  ;;  %p1167_p7 = scmp.lt.s32.totalorder %s1158_s13, %s1158_s13 }
  0x15   : > { %p1149_p12 = pneg %p1432_p11 }
  0x16   : > { %p1168_p9 = por %p1167_p7, %p1166_p5 }
  0x17   : > { %p1161_p0 = pnand %p1159_p13, %p1149_p12 }
  0x19   : > { %p1162_p3 = pneg %p1161_p0 }
  0x1b   : > { %p1169_p10 = pnand %p1168_p9, %p1162_p3 }
  0x1d   : > { %1172 = shalt.err (!%p1169_p10)
}
  0x1e   : > { %s1330_s14 = smov 128   ;;  %s1331_s15 = smov 8  }
  0x1f   : > { %1047 = dma.hbm_to_vmem [thread:$0]  (!%p1432_p11), %s1707_s2, 512, %s204_s7, [#allocation6], %s1330_s14, %s1330_s14, %s1331_s15  }
  0x20   : > { %s1184_s18 = scalar_lea.vmem %s220_s10, 256  ;;  %p1192_p2 = scmp.lt.s32.totalorder %s220_s10, %s220_s10 }
  0x21   : > { %p1185_p1 = scmp.ne.s32.totalorder %s220_s10, %s1184_s18  ;;  %p1193_p6 = scmp.lt.s32.totalorder %s1184_s18, %s1184_s18 }
  0x23   : > { %p1187_p13 = pnand %p1185_p1, %p1149_p12  ;;  %p1194_p5 = por %p1193_p6, %p1192_p2 }
  0x25   : > { %p1188_p0 = pneg %p1187_p13 }
  0x27   : > { %p1195_p3 = pnand %p1194_p5, %p1188_p0 }
  0x29   : > { %1198 = shalt.err (!%p1195_p3)
}
  0x2a   : > { %1050 = dma.hbm_to_vmem [thread:$0]  (!%p1432_p11), %s1709_s4, 256, %s220_s10, [#allocation6], %s1330_s14, %s1330_s14, %s1331_s15  }
  0x2b   : > { %s1210_s26 = scalar_lea.vmem %s233_s12, 512  ;;  %p1218_p9 = scmp.lt.s32.totalorder %s233_s12, %s233_s12 }
  0x2c   : > { %p1211_p10 = scmp.ne.s32.totalorder %s233_s12, %s1210_s26  ;;  %p1219_p13 = scmp.lt.s32.totalorder %s1210_s26, %s1210_s26 }
  0x2e   : > { %p1213_p7 = pnand %p1211_p10, %p1149_p12  ;;  %p1220_p4 = por %p1219_p13, %p1218_p9 }
  0x30   : > { %p1214_p1 = pneg %p1213_p7 }
  0x32   : > { %p1221_p2 = pnand %p1220_p4, %p1214_p1 }
  0x34   : > { %1224 = shalt.err (!%p1221_p2)
}
  0x35   : > { %s1714_s30 = smov 256   ;;  %s1715_s7 = smov 16  }
  0x36   : > { %1053 = dma.hbm_to_vmem [thread:$0]  (!%p1432_p11), %s1710_s5, 512, %s233_s12, [#allocation9], %s1714_s30, %s1714_s30, %s1715_s7  }
  0x37   : > { %s1466_s11 = sadd.s32 1, %s1325_s24   ;;  %s31_s14 = sadd.s32 1, %s1321_s23 }
  0x38   : > { %s28_s13 = ssub.s32 %s1325_s24, %s1466_s11  ;;  %p38_p6 = scmp.ne.s32.totalorder %s1321_s23, %s1317_s22 }
  0x39   : > { %p29_p4 = scmp.eq.s32.totalorder %s28_s13, 0  ;;  %p39_p12 = scmp.eq.s32.totalorder %s1325_s24, 0 }
  0x3a   : > { %p1065_p0 = scmp.lt.s32.totalorder %s1325_s24, 2  ;;  %p1722_p3 = scmp.eq.s32.totalorder %s1404_s25, 1 }
  0x3b   : > { %s1476_s15 = scalar_select %p29_p4, %s1321_s23, %s31_s14  }
  0x3c   : > { %p40_p5 = por %p39_p12, %p38_p6  ;;  %p1480_p10 = por %p1722_p3, %p38_p6 }
  0x3d   : > { %s246_s16 = sand.u32 1, %s1321_s23   ;;  %s996_s17 = sshll.u32 %s1325_s24, 9 }
  0x3e   : > { %s1723_s8 = scalar_select %p1480_p10, 1, 0 }
  0x3f   : > { %s970_s12 = sshll.u32 %s246_s16, 5  ;;  %s1489_s20 = scalar_lea.hbm %s1705_s0, %s996_s17 }
  0x40   : > { %s250_s26 = scalar_lea.vmem [#allocation2], %s970_s12  ;;  %p1491_p11 = pnand %p1065_p0, %p40_p5 }
  0x41   : > { %s257_s9 = sshll.u32 %s250_s26, 4  ;;  %s1497_s13 = scalar_lea.sflag [#allocation3], %s246_s16  ;;  %s1495_s9 = int_to_ptr.vmem [resolvable:$true] %s257_s9 }
  0x42   : > { %s1225_s14 = scalar_lea.hbm %s1489_s20, 512  ;;  %p1227_p1 = pneg %p1491_p11 }
  0x43   : > { %p1226_p7 = scmp.ne.s32.totalorder %s1489_s20, %s1225_s14  ;;  %s1230_s12 = scalar_lea.hbm %s1705_s0, 1024 }
  0x44   : > { %p1231_p2 = scmp.lt.s32.totalorder %s1489_s20, %s1705_s0  ;;  %p1232_p4 = scmp.lt.s32.totalorder %s1230_s12, %s1225_s14 }
  0x45   : > { %p1228_p9 = pnand %p1227_p1, %p1226_p7 }
  0x46   : > { %p1233_p6 = por %p1232_p4, %p1231_p2 }
  0x47   : > { %p1229_p13 = pneg %p1228_p9 }
  0x49   : > { %p1234_p12 = pnand %p1233_p6, %p1229_p13 }
  0x4b   : > { %1237 = shalt.err (!%p1234_p12)
}
  0x4c   : > { %s1238_s16 = scalar_lea.vmem %s1495_s9, 512  ;;  %s1334_s30 = smov [#allocation2]  }
  0x4d   : > { %p1239_p0 = scmp.ne.s32.totalorder %s1495_s9, %s1238_s16  ;;  %s1243_s7 = sshll.u32 %s1334_s30, 4  ;;  %s1244_s7 = int_to_ptr.vmem [resolvable:$false] %s1243_s7 }
  0x4e   : > { %s1245_s17 = scalar_lea.vmem %s1244_s7, 1024  ;;  %p1246_p7 = scmp.lt.s32.totalorder %s1495_s9, %s1244_s7 }
  0x4f   : > { %p1241_p5 = pnand %p1239_p0, %p1227_p1  ;;  %p1247_p9 = scmp.lt.s32.totalorder %s1245_s17, %s1238_s16 }
  0x51   : > { %p1242_p3 = pneg %p1241_p5  ;;  %p1248_p10 = por %p1247_p9, %p1246_p7 }
  0x53   : > { %p1249_p8 = pnand %p1248_p10, %p1242_p3 }
  0x55   : > { %1252 = shalt.err (!%p1249_p8)
}
  0x56   : > { %s1725_s14 = smov 16   ;;  %s1726_s18 = smov 256  }
  0x57   : > { %1057 = dma.hbm_to_vmem [thread:$0]  (!%p1491_p11), %s1489_s20, 512, %s1495_s9, %s1497_s13, %s1726_s18, %s1726_s18, %s1725_s14  }
  0x58   : > { %p1727_p1 = scmp.ne.s32.totalorder %s1720_s29, 0 }
  0x59   : > { %s1524_s30 = sand.u32 (!%p1727_p1), 1, %s1317_s22   ;;  %p1728_p8 = scmp.ne.s32.totalorder (!%p1727_p1), %s1718_s27, 0 }
  0x5a   : > { %277 = sbr.rel (%p1727_p1) target bundleno = 766 (0x2fe), region = 44  ;;  %s974_s7 = sshll.u32 (!%p1727_p1), %s1524_s30, 5 }
  0x5b   : > { %s280_s12 = scalar_lea.sflag (!%p1727_p1), [#allocation3], %s1524_s30  ;;  %s283_s10 = scalar_lea.vmem (!%p1727_p1), [#allocation2], %s974_s7 }
  0x5f   : > { %1296 = dma.done.wait (%p1728_p8), %s280_s12, 512  }
  0x60   : > { %1298 = vsyncadd (%p1728_p8), %s280_s12, 4294966784  ;;  %p1729_p10 = scmp.eq.s32.totalorder %s1404_s25, 0 }
  0x62   : > { %1300 = dma.done.wait (%p1729_p10), [#allocation6], 768   ;;  %p1730_p11 = pmov %p1729_p10 }
  0x63   : > { %p1731_p13 = pmov %p1729_p10 }
  0x64   : > { %1302 = vsyncadd (%p1730_p11), [#allocation6], 4294966528 }
  0x65   : > { %1304 = dma.done.wait (%p1731_p13), [#allocation9], 512   ;;  %p1732_p2 = pmov %p1729_p10 }
  0x66   : > { %v1542_v0 = vld [vmem:[%s283_s10 + $0x10] sm:$0xff]  ;;  %v1544_v1 = vld [vmem:[%s283_s10 + $0x18] sm:$0xff]  ;;  %v1546_v2 = vld [vmem:[%s283_s10] sm:$0xff]  ;;  %vm359_vm0 = vcmask 130048   ;;  %p329_p4 = scmp.lt.s32.totalorder %s1404_s25, 1  ;;  %s1335_s19 = smov 111   ;;  %v493_v24 = vlaneseq }
  0x67   : > { %1306 = vsyncadd (%p1732_p2), [#allocation9], 4294966784  ;;  %v341_v3 = vadd.f32 %v1544_v1, %v1542_v0  ;;  %v1550_v4 = vld [vmem:[%s283_s10 + $0x8] sm:$0xff]  ;;  %v346_v5 = vmul.f32 %v1542_v0, %v1542_v0  ;;  %v347_v6 = vmul.f32 %v1544_v1, %v1544_v1  ;;  %v344_v7 = vmul.f32 %v1546_v2, %v1546_v2  ;;  %v357_v12 = vld [vmem:[#allocation7] sm:$0xff]  ;;  %s1336_s26 = smov 112   ;;  %s1337_s16 = smov 113  }
  0x68   : > { %v338_v8 = vadd.f32 %v1550_v4, %v1546_v2  ;;  %v345_v9 = vmul.f32 %v1550_v4, %v1550_v4  ;;  %1007 = vmatprep.mubr.msk.f32.mxu0 %vm359_vm0, %v357_v12  ;;  %s330_s27 = scalar_select %p329_p4, %s1404_s25, 1  ;;  %vm354_vm1 = vcmask 7168   ;;  %v358_v21 = vld [vmem:[#allocation7 + $0x8] sm:$0xff]  ;;  %v1343_v22 = vmov 0  }
  0x69   : > { %342 = vadd.xlane.f32.xlu0 %v341_v3  ;;  %v351_v10 = vadd.f32 %v347_v6, %v346_v5  ;;  %s1338_s17 = smov 127   ;;  %s1339_s14 = smov 1   ;;  %1122 = vset.pattern.permute.xlu1 %v1343_v22  ;;  %v1595_v26 = vand.u32 127, %v493_v24  ;;  %v501_v27 = vshrl.u32 %v493_v24, 7  ;;  %v1344_v30 = vmov 0.0  }
  0x6a   : > { %339 = vadd.xlane.f32.xlu1 %v338_v8  ;;  %v348_v11 = vadd.f32 %v345_v9, %v344_v7  ;;  %s997_s29 = sshll.u32 %s330_s27, 4  ;;  %s1340_s18 = smov 15   ;;  %1121 = vset.pattern.permute.xlu0 %v1343_v22  ;;  %v652_v28 = vld [vmem:[#allocation8 + $0x10] ss:$8 sm:$0x3]  ;;  %vm694_vm10 = vcmask 588800  }
  0x6b   : > { %s333_s13 = scalar_lea.vmem %s1706_s1, %s997_s29  ;;  %s1341_s12 = smov 16   ;;  %v630_v29 = vld [vmem:[#allocation8 + $0x7] ss:$8 sm:$0x3]  ;;  %777 = vmatprep.mubr.f32.mxu1 %v1344_v30  ;;  %v1599_v32 = vsub.s32 0, %v501_v27  ;;  %v1601_v33 = vsub.s32 1, %v501_v27 }
  0x6c   : > { %v1568_v13 = vld [vmem:[%s333_s13 + $0x8] sm:$0xff]  ;;  %v1570_v14 = vld [vmem:[%s333_s13] sm:$0xff]  ;;  %s1342_s10 = smov 17   ;;  %vm648_vm2 = vcmp.lt.s32.totalorder %v1595_v26, 111  ;;  %vm626_vm3 = vcmp.lt.s32.totalorder %v1595_v26, 112  ;;  %vm604_vm4 = vcmp.lt.s32.totalorder %v1595_v26, 113 }
  0x6d   : > { %352 = vadd.xlane.f32.xlu0 %v351_v10  ;;  %v657_v37 = vrot.slane %v652_v28, %v1599_v32  ;;  %v661_v38 = vrot.slane %v652_v28, %v1601_v33  ;;  %v635_v39 = vrot.slane %v630_v29, %v1599_v32  ;;  %v639_v40 = vrot.slane %v630_v29, %v1601_v33  ;;  %v608_v41 = vld [vmem:[#allocation8 + $0x6] ss:$8 sm:$0x3]  ;;  %v586_v52 = vld [vmem:[#allocation8 + $0x5] ss:$8 sm:$0x3] }
  0x6e   : > { %349 = vadd.xlane.f32.xlu1 %v348_v11  ;;  %v613_v48 = vrot.slane %v608_v41, %v1599_v32  ;;  %v617_v51 = vrot.slane %v608_v41, %v1601_v33  ;;  %vm582_vm5 = vcmp.lt.s32.totalorder %v1595_v26, 127  ;;  %v591_v59 = vrot.slane %v586_v52, %v1599_v32  ;;  %v564_v61 = vld [vmem:[#allocation8 + $0x3] ss:$8 sm:$0x3]  ;;  %p1733_p12 = scmp.ne.s32.totalorder %s1723_s8, 0  ;;  %s1346_s20 = smov [#allocation10]  }
  0x6f   : > { %v595_v60 = vrot.slane %v586_v52, %v1601_v33  ;;  %vm560_vm6 = vcmp.lt.s32.totalorder %v1595_v26, 1  ;;  %v569_v7 = vrot.slane %v564_v61, %v1599_v32  ;;  %v573_v8 = vrot.slane %v564_v61, %v1601_v33  ;;  %v542_v10 = vld [vmem:[#allocation8 + $0x2] ss:$8 sm:$0x3]  ;;  %s1257_s9 = sshll.u32 %s1346_s20, 4  ;;  %s1258_s9 = int_to_ptr.vmem [resolvable:$false] %s1257_s9 }
  0x70   : > { %vm538_vm7 = vcmp.lt.s32.totalorder %v1595_v26, 15  ;;  %vm516_vm8 = vcmp.lt.s32.totalorder %v1595_v26, 16  ;;  %vm495_vm9 = vcmp.lt.s32.totalorder %v1595_v26, 17  ;;  %v667_v26 = vld [vmem:[#allocation5 + $0x8] sm:$0xff]  ;;  %v1345_v52 = vmov 1   ;;  %s1259_s13 = scalar_lea.vmem %s1258_s9, 1024 }
  0x7f   : > { %646 = vrot.lane.b32.xlu1 %v1568_v13, %s1335_s19 }
  0x83   : > { %644 = vrot.lane.b32.xlu0 %v1570_v14, %s1335_s19  ;;  %622 = vrot.lane.b32.xlu1 %v1570_v14, %s1336_s26 }
  0x87   : > { %600 = vrot.lane.b32.xlu0 %v1570_v14, %s1337_s16  ;;  %624 = vrot.lane.b32.xlu1 %v1568_v13, %s1336_s26 }
  0x8b   : > { %578 = vrot.lane.b32.xlu0 %v1570_v14, %s1338_s17  ;;  %602 = vrot.lane.b32.xlu1 %v1568_v13, %s1337_s16 }
  0x8f   : > { %556 = vrot.lane.b32.xlu0 %v1570_v14, %s1339_s14  ;;  %580 = vrot.lane.b32.xlu1 %v1568_v13, %s1338_s17  ;;  %s328_s17 = scalar_lea.vmem [#allocation10], %s974_s7 }
  0x93   : > { %534 = vrot.lane.b32.xlu0 %v1570_v14, %s1340_s18  ;;  %558 = vrot.lane.b32.xlu1 %v1568_v13, %s1339_s14 }
  0x97   : > { %512 = vrot.lane.b32.xlu0 %v1570_v14, %s1341_s12  ;;  %536 = vrot.lane.b32.xlu1 %v1568_v13, %s1340_s18  ;;  %s998_s18 = sshll.u32 %s1404_s25, 9  ;;  %s837_s25 = scalar_lea.sflag [#allocation4], %s1524_s30 }
  0x98   : > { %s1661_s27 = scalar_lea.hbm %s1711_s6, %s998_s18 }
  0x9b   : > { %489 = vrot.lane.b32.xlu0 %v1570_v14, %s1342_s10  ;;  %514 = vrot.lane.b32.xlu1 %v1568_v13, %s1341_s12 }
  0x9f   : > { %491 = vrot.lane.b32.xlu1 %v1568_v13, %s1342_s10 }
  0xf2   : > { %v343_v15 = vpop.xlane.xlu0 %342 }
  0xf3   : > { %v340_v16 = vpop.xlane.xlu1 %339 }
  0xf6   : > { %v353_v17 = vpop.xlane.xlu0 %352 }
  0xf7   : > { %v350_v18 = vpop.xlane.xlu1 %349  ;;  %v356_v19 = vsel %vm354_vm1, %v343_v15, %v353_v17 }
  0xf8   : > { %1003 = vmatprep.subr.mxu0 %v356_v19  ;;  %v355_v20 = vsel %vm354_vm1, %v340_v16, %v350_v18  ;;  %v547_v16 = vrot.slane %v542_v10, %v1599_v32 }
  0xf9   : > { %1004 = vmatpush3.msra.mxu0 %v356_v19  ;;  %v551_v19 = vrot.slane %v542_v10, %v1601_v33 }
  0xfa   : > { %1005 = vmatprep.subr.mxu0 %v355_v20  ;;  %v645_v25 = vpop.permute.xlu0 %644 }
  0xfb   : > { %1006 = vmatpush3.msra.mxu0 %v355_v20  ;;  %v647_v23 = vpop.permute.xlu1 %646  ;;  %v520_v20 = vld [vmem:[#allocation8 + $0x1] ss:$8 sm:$0x3] }
  0xfc   : > { %1008 = vmatmul.mubr.msk.f32.vlgmr.msra.gmra.mxu0 %vm359_vm0, %v358_v21  ;;  %v649_v35 = vsel %vm648_vm2, %v645_v25, %v647_v23  ;;  %v650_v36 = vsel %vm648_vm2, %v647_v23, %v645_v25  ;;  %v525_v29 = vrot.slane %v520_v20, %v1599_v32 }
  0xfd   : > { %771 = vmatprep.mubr.f32.mxu0 %v1344_v30  ;;  %v664_v42 = vmul.f32 %v657_v37, %v649_v35  ;;  %v665_v43 = vmul.f32 %v661_v38, %v650_v36 }
  0xfe   : > { %v601_v34 = vpop.permute.xlu0 %600 }
  0xff   : > { %v623_v31 = vpop.permute.xlu1 %622  ;;  %721 = vmatprep.subr.mxu0 %v665_v43  ;;  %1010 = vmatprep.subr.mxu1 %v665_v43 }
 0x100   : > { %722 = vmatpush1.msra.mxu0 %v664_v42  ;;  %1019 = vmatpush1.msra.mxu1 %v664_v42 }
 0x102   : > { %v579_v45 = vpop.permute.xlu0 %578 }
 0x103   : > { %v625_v44 = vpop.permute.xlu1 %624 }
 0x104   : > { %v627_v46 = vsel %vm626_vm3, %v623_v31, %v625_v44  ;;  %v628_v47 = vsel %vm626_vm3, %v625_v44, %v623_v31  ;;  %v498_v31 = vld [vmem:[#allocation8] ss:$8 sm:$0x3] }
 0x105   : > { %v642_v49 = vmul.f32 %v635_v39, %v627_v46  ;;  %v643_v50 = vmul.f32 %v639_v40, %v628_v47  ;;  %v503_v39 = vrot.slane %v498_v31, %v1599_v32  ;;  %v507_v40 = vrot.slane %v498_v31, %v1601_v33  ;;  %v666_v46 = vld [vmem:[#allocation5] sm:$0xff]  ;;  %v668_v32 = vld [vmem:[#allocation5 + $0x10] sm:$0xff] }
 0x106   : > { %v557_v54 = vpop.permute.xlu0 %556 }
 0x107   : > { %v603_v53 = vpop.permute.xlu1 %602  ;;  %723 = vmatprep.subr.mxu0 %v643_v50  ;;  %1011 = vmatprep.subr.mxu1 %v643_v50 }
 0x108   : > { %v605_v55 = vsel %vm604_vm4, %v601_v34, %v603_v53  ;;  %v606_v56 = vsel %vm604_vm4, %v603_v53, %v601_v34  ;;  %724 = vmatpush1.msra.mxu0 %v642_v49  ;;  %1020 = vmatpush1.msra.mxu1 %v642_v49 }
 0x109   : > { %v620_v57 = vmul.f32 %v613_v48, %v605_v55  ;;  %v621_v58 = vmul.f32 %v617_v51, %v606_v56  ;;  %v670_v51 = vld [vmem:[%s1708_s3] sm:$0xff] }
 0x10a   : > { %v535_v9 = vpop.permute.xlu0 %534 }
 0x10b   : > { %v581_v62 = vpop.permute.xlu1 %580  ;;  %725 = vmatprep.subr.mxu0 %v621_v58  ;;  %1012 = vmatprep.subr.mxu1 %v621_v58 }
 0x10c   : > { %v583_v63 = vsel %vm582_vm5, %v579_v45, %v581_v62  ;;  %v584_v3 = vsel %vm582_vm5, %v581_v62, %v579_v45  ;;  %726 = vmatpush1.msra.mxu0 %v620_v57  ;;  %1021 = vmatpush1.msra.mxu1 %v620_v57 }
 0x10d   : > { %v598_v5 = vmul.f32 %v591_v59, %v583_v63  ;;  %v599_v6 = vmul.f32 %v595_v60, %v584_v3  ;;  %v672_v63 = vld [vmem:[%s1708_s3 + $0x10] sm:$0xff]  ;;  %v673_v3 = vld [vmem:[%s1708_s3 + $0x18] sm:$0xff] }
 0x10e   : > { %v513_v23 = vpop.permute.xlu0 %512 }
 0x10f   : > { %v559_v11 = vpop.permute.xlu1 %558  ;;  %727 = vmatprep.subr.mxu0 %v599_v6  ;;  %1013 = vmatprep.subr.mxu1 %v599_v6 }
 0x110   : > { %v561_v12 = vsel %vm560_vm6, %v557_v54, %v559_v11  ;;  %v562_v15 = vsel %vm560_vm6, %v559_v11, %v557_v54  ;;  %728 = vmatpush1.msra.mxu0 %v598_v5  ;;  %1022 = vmatpush1.msra.mxu1 %v598_v5 }
 0x111   : > { %v576_v17 = vmul.f32 %v569_v7, %v562_v15  ;;  %v577_v18 = vmul.f32 %v573_v8, %v561_v12  ;;  %729 = vmatprep.subr.mxu0 %v1568_v13  ;;  %1014 = vmatprep.subr.mxu1 %v1568_v13  ;;  %v529_v13 = vrot.slane %v520_v20, %v1601_v33  ;;  %v669_v33 = vld [vmem:[#allocation5 + $0x18] sm:$0xff] }
 0x112   : > { %730 = vmatpush1.msra.mxu0 %v1570_v14  ;;  %1023 = vmatpush1.msra.mxu1 %v1570_v14  ;;  %v490_v38 = vpop.permute.xlu0 %489 }
 0x113   : > { %v537_v21 = vpop.permute.xlu1 %536  ;;  %731 = vmatprep.subr.mxu0 %v577_v18  ;;  %1015 = vmatprep.subr.mxu1 %v577_v18 }
 0x114   : > { %v539_v24 = vsel %vm538_vm7, %v535_v9, %v537_v21  ;;  %v540_v25 = vsel %vm538_vm7, %v537_v21, %v535_v9  ;;  %732 = vmatpush1.msra.mxu0 %v576_v17  ;;  %1024 = vmatpush1.msra.mxu1 %v576_v17 }
 0x115   : > { %v554_v27 = vmul.f32 %v547_v16, %v540_v25  ;;  %v555_v28 = vmul.f32 %v551_v19, %v539_v24 }
 0x117   : > { %v515_v34 = vpop.permute.xlu1 %514  ;;  %733 = vmatprep.subr.mxu0 %v555_v28  ;;  %1016 = vmatprep.subr.mxu1 %v555_v28 }
 0x118   : > { %v517_v14 = vsel %vm516_vm8, %v513_v23, %v515_v34  ;;  %v518_v35 = vsel %vm516_vm8, %v515_v34, %v513_v23  ;;  %734 = vmatpush1.msra.mxu0 %v554_v27  ;;  %1025 = vmatpush1.msra.mxu1 %v554_v27 }
 0x119   : > { %v532_v36 = vmul.f32 %v525_v29, %v518_v35  ;;  %v533_v37 = vmul.f32 %v529_v13, %v517_v14 }
 0x11b   : > { %v492_v41 = vpop.permute.xlu1 %491  ;;  %735 = vmatprep.subr.mxu0 %v533_v37  ;;  %1017 = vmatprep.subr.mxu1 %v533_v37 }
 0x11c   : > { %v496_v42 = vsel %vm495_vm9, %v490_v38, %v492_v41  ;;  %v497_v43 = vsel %vm495_vm9, %v492_v41, %v490_v38  ;;  %736 = vmatpush1.msra.mxu0 %v532_v36  ;;  %1026 = vmatpush1.msra.mxu1 %v532_v36 }
 0x11d   : > { %v510_v44 = vmul.f32 %v503_v39, %v497_v43  ;;  %v511_v45 = vmul.f32 %v507_v40, %v496_v42 }
 0x11f   : > { %737 = vmatprep.subr.mxu0 %v511_v45  ;;  %1018 = vmatprep.subr.mxu1 %v511_v45 }
 0x120   : > { %738 = vmatpush1.msra.mxu0 %v510_v44  ;;  %1027 = vmatpush1.msra.mxu1 %v510_v44 }
 0x121   : > { %983 = vmatmul.mubr.msk.f32.vlgmr.msra.gmra.mxu0 %vm694_vm10, %v666_v46  ;;  %984 = vmatmul.mubr.msk.f32.vlgmr.msra.gmra.mxu1 %vm694_vm10, %v667_v26 }
 0x122   : > { %783 = vmatprep.mubr.f32.mxu1 %v1344_v30 }
 0x125   : > { %985 = vmatmul.mubr.msk.f32.gmra.mxu1 %vm694_vm10, %v668_v32 }
 0x126   : > { %789 = vmatprep.mubr.f32.mxu1 %v1344_v30  ;;  %v671_v30 = vld [vmem:[%s1708_s3 + $0x8] sm:$0xff] }
 0x129   : > { %986 = vmatmul.mubr.msk.f32.gmra.mxu1 %vm694_vm10, %v669_v33 }
 0x1bc   : > { %v1009_v47 = vpop.f32.mrf.mxu0 }
 0x1bd   : > { %v442_v48 = vmul.f32 %v1009_v47, %v1009_v47 }
 0x1be   : > { %v432_v49 = vpop.f32.mrf.mxu0 }
 0x1bf   : > { %v441_v50 = vmul.f32 %v432_v49, %v432_v49  ;;  %447 = vrot.lane.b32.xlu1 %v442_v48, %s1339_s14 }
 0x1c1   : > { %445 = vrot.lane.b32.xlu0 %v441_v50, %s1339_s14  ;;  %s850_s14 = sshll.u32 %s328_s17, 4  ;;  %s1656_s14 = int_to_ptr.vmem [resolvable:$true] %s850_s14 }
 0x1c2   : > { %s1253_s29 = scalar_lea.vmem %s1656_s14, 512  ;;  %p1260_p3 = scmp.lt.s32.totalorder %s1656_s14, %s1258_s9 }
 0x1c3   : > { %462 = vperm.xlu1 %1122, %v1009_v47   ;;  %p1254_p6 = scmp.ne.s32.totalorder %s1656_s14, %s1253_s29  ;;  %p1261_p7 = scmp.lt.s32.totalorder %s1259_s13, %s1253_s29 }
 0x1c5   : > { %457 = vperm.xlu0 %1121, %v432_v49   ;;  %p1255_p0 = pnand %p1254_p6, %p1733_p12  ;;  %p1262_p9 = por %p1261_p7, %p1260_p3 }
 0x1c7   : > { %676 = vperm.xlu1 %1122, %v670_v51   ;;  %p1256_p5 = pneg %p1255_p0 }
 0x1c9   : > { %1123 = vset.pattern.permute.xlu0 %v1345_v52  ;;  %p1263_p1 = pnand %p1262_p9, %p1256_p5 }
 0x1cb   : > { %681 = vperm.xlu1 %1122, %v671_v30  }
 0x1cf   : > { %1124 = vset.pattern.permute.xlu1 %v1345_v52 }
 0x1e1   : > { %v779_v6 = vpop.f32.mrf.mxu1  ;;  %v773_v9 = vpop.f32.mrf.mxu0 }
 0x1e3   : > { %v781_v8 = vpop.f32.mrf.mxu1  ;;  %v775_v15 = vpop.f32.mrf.mxu0 }
 0x1e5   : > { %v785_v10 = vpop.f32.mrf.mxu1 }
 0x1e7   : > { %v787_v16 = vpop.f32.mrf.mxu1 }
 0x1e9   : > { %v791_v13 = vpop.f32.mrf.mxu1 }
 0x231   : > { %v448_v53 = vpop.permute.xlu1 %447 }
 0x232   : > { %v452_v54 = vsub.f32 %v1009_v47, %v448_v53 }
 0x233   : > { %v446_v55 = vpop.permute.xlu0 %445 }
 0x234   : > { %v454_v56 = vmax.f32 %v452_v54, 0.0  ;;  %v451_v57 = vsub.f32 %v432_v49, %v446_v55 }
 0x236   : > { %v470_v58 = vadd.f32 1e-05, %v454_v56  ;;  %v453_v59 = vmax.f32 %v451_v57, 0.0 }
 0x238   : > { %1127 = vrsqrt.f32 %v470_v58  ;;  %v469_v60 = vadd.f32 1e-05, %v453_v59 }
 0x23a   : > { %1129 = vrsqrt.f32 %v469_v60 }
 0x23e   : > { %v463_v5 = vpop.permute.xlu1 %462 }
 0x23f   : > { %v467_v18 = vsub.f32 %v1542_v0, %v463_v5  ;;  %v468_v19 = vsub.f32 %v1544_v1, %v463_v5 }
 0x240   : > { %v458_v11 = vpop.permute.xlu0 %457 }
 0x241   : > { %v465_v20 = vsub.f32 %v1546_v2, %v458_v11  ;;  %v793_v2 = vpop.f32.mrf.mxu1 }
 0x242   : > { %v677_v7 = vpop.permute.xlu1 %676 }
 0x243   : > { %v774_v21 = vadd.f32 %v773_v9, %v677_v7  ;;  %v776_v23 = vadd.f32 %v775_v15, %v677_v7 }
 0x245   : > { %v1128_v61 = vpop.eup %1127 }
 0x246   : > { %480 = vperm.xlu0 %1123, %v1128_v61   ;;  %v682_v12 = vpop.permute.xlu1 %681 }
 0x247   : > { %v1130_v62 = vpop.eup %1129  ;;  %v780_v31 = vadd.f32 %v779_v6, %v682_v12  ;;  %v782_v34 = vadd.f32 %v781_v8, %v682_v12 }
 0x248   : > { %475 = vperm.xlu1 %1124, %v1130_v62  }
 0x24a   : > { %1125 = vset.pattern.permute.xlu0 %v1343_v22 }
 0x24b   : > { %686 = vperm.xlu0 %1125, %v672_v63  }
 0x24c   : > { %1126 = vset.pattern.permute.xlu1 %v1343_v22  ;;  %v466_v22 = vsub.f32 %v1550_v4, %v458_v11 }
 0x24d   : > { %691 = vperm.xlu1 %1126, %v673_v3  }
 0x2c1   : > { %v481_v17 = vpop.permute.xlu0 %480 }
 0x2c2   : > { %v485_v25 = vmul.f32 %v481_v17, %v467_v18  ;;  %v486_v27 = vmul.f32 %v481_v17, %v468_v19 }
 0x2c3   : > { %v476_v24 = vpop.permute.xlu1 %475 }
 0x2c4   : > { %v483_v28 = vmul.f32 %v476_v24, %v465_v20  ;;  %v484_v29 = vmul.f32 %v476_v24, %v466_v22  ;;  %v798_v1 = vmul.f32 %v780_v31, %v485_v25  ;;  %v799_v38 = vmul.f32 %v782_v34, %v486_v27 }
 0x2c6   : > { %v796_v14 = vmul.f32 %v774_v21, %v483_v28  ;;  %v797_v35 = vmul.f32 %v776_v23, %v484_v29  ;;  %v687_v36 = vpop.permute.xlu0 %686 }
 0x2c7   : > { %v786_v0 = vadd.f32 %v785_v10, %v687_v36  ;;  %v788_v37 = vadd.f32 %v787_v16, %v687_v36 }
 0x2c8   : > { %v692_v39 = vpop.permute.xlu1 %691 }
 0x2c9   : > { %v800_v4 = vadd.f32 %v796_v14, %v786_v0  ;;  %v801_v40 = vadd.f32 %v797_v35, %v788_v37  ;;  %v792_v41 = vadd.f32 %v791_v13, %v692_v39  ;;  %v794_v42 = vadd.f32 %v793_v2, %v692_v39 }
 0x2cb   : > { %v987_v43 = vmul.f32 -1.442695, %v800_v4  ;;  %v988_v44 = vmul.f32 -1.442695, %v801_v40  ;;  %v802_v45 = vadd.f32 %v798_v1, %v792_v41  ;;  %v803_v46 = vadd.f32 %v799_v38, %v794_v42 }
 0x2cd   : > { %1131 = vpow2.f32 %v987_v43  ;;  %v989_v26 = vmul.f32 -1.442695, %v802_v45  ;;  %v990_v32 = vmul.f32 -1.442695, %v803_v46 }
 0x2ce   : > { %1133 = vpow2.f32 %v988_v44 }
 0x2cf   : > { %1135 = vpow2.f32 %v989_v26 }
 0x2d0   : > { %1137 = vpow2.f32 %v990_v32 }
 0x2da   : > { %v1132_v33 = vpop.eup %1131 }
 0x2db   : > { %v1134_v47 = vpop.eup %1133  ;;  %v816_v48 = vadd.f32 1.0, %v1132_v33 }
 0x2dc   : > { %v1136_v49 = vpop.eup %1135  ;;  %v817_v50 = vadd.f32 1.0, %v1134_v47 }
 0x2dd   : > { %v1138_v51 = vpop.eup %1137  ;;  %1139 = vrcp.f32 %v816_v48  ;;  %v818_v30 = vadd.f32 1.0, %v1136_v49 }
 0x2de   : > { %1141 = vrcp.f32 %v817_v50  ;;  %v819_v52 = vadd.f32 1.0, %v1138_v51 }
 0x2df   : > { %1143 = vrcp.f32 %v818_v30 }
 0x2e0   : > { %1145 = vrcp.f32 %v819_v52 }
 0x2ea   : > { %v1140_v53 = vpop.eup %1139 }
 0x2eb   : > { %v1142_v54 = vpop.eup %1141  ;;  %v828_v55 = vmul.f32 %v1140_v53, %v800_v4 }
 0x2ec   : > { %v1144_v56 = vpop.eup %1143  ;;  %v829_v57 = vmul.f32 %v1142_v54, %v801_v40 }
 0x2ed   : > { %v1146_v58 = vpop.eup %1145  ;;  %832 = vst [vmem:[%s328_s17] sm:$0xff] %v828_v55  ;;  %v830_v59 = vmul.f32 %v1144_v56, %v802_v45 }
 0x2ee   : > { %833 = vst [vmem:[%s328_s17 + $0x8] sm:$0xff] %v829_v57  ;;  %v831_v60 = vmul.f32 %v1146_v58, %v803_v46 }
 0x2ef   : > { %834 = vst [vmem:[%s328_s17 + $0x10] sm:$0xff] %v830_v59 }
 0x2f0   : > { %835 = vst [vmem:[%s328_s17 + $0x18] sm:$0xff] %v831_v60 }
 0x2f1   : > { %1266 = shalt.err (!%p1263_p1)
}
 0x2f2   : > { %s1267_s19 = scalar_lea.hbm %s1661_s27, 512  ;;  %s1271_s17 = scalar_lea.hbm %s1711_s6, 1024 }
 0x2f3   : > { %p1268_p8 = scmp.ne.s32.totalorder %s1661_s27, %s1267_s19  ;;  %p1272_p13 = scmp.lt.s32.totalorder %s1661_s27, %s1711_s6 }
 0x2f4   : > { %p1273_p2 = scmp.lt.s32.totalorder %s1271_s17, %s1267_s19 }
 0x2f5   : > { %p1269_p10 = pnand %p1268_p8, %p1733_p12 }
 0x2f6   : > { %p1274_p4 = por %p1273_p2, %p1272_p13 }
 0x2f7   : > { %p1270_p11 = pneg %p1269_p10 }
 0x2f9   : > { %p1275_p6 = pnand %p1274_p4, %p1270_p11 }
 0x2fb   : > { %1278 = shalt.err (!%p1275_p6)
}
 0x2fc   : > { %s1347_s7 = smov 256  }
 0x2fd   : > { %1042 = dma.vmem_to_hbm [thread:$0]  (%p1733_p12), %s1656_s14, 512, %s1661_s27, %s837_s25, %s1347_s7, %s1347_s7, %s1341_s12  }
 0x2fe PF: > { %s865_s29 = sand.u32 1, %s1313_s21   ;;  %p1734_p0 = scmp.ne.s32.totalorder %s1719_s28, 0 }
 0x2ff   : > { %p1735_p5 = scmp.ge.s32.totalorder %s1325_s24, 2  ;;  %s866_s20 = scalar_lea.sflag [#allocation4], %s865_s29 }
 0x301   : > { %p1059_p3 = pnand %p1735_p5, %p1734_p0 }
 0x303   : > { %p1060_p7 = pneg %p1059_p3 }
 0x305   : > { %1308 = dma.done.wait (%p1060_p7), %s866_s20, 512  }
 0x306   : > { %1310 = vsyncadd (%p1060_p7), %s866_s20, 4294966784  ;;  %p21_p9 = scmp.ge.s32.totalorder %s1466_s11, 4   ;;  %s1736_s21 = smov %s1317_s22 }
 0x307   : > { %s1737_s22 = smov %s1321_s23  ;;  %s1738_s23 = smov %s1476_s15 }
 0x308   : > { %s1739_s24 = smov %s1466_s11  ;;  %23 = sbr.rel (!%p21_p9) target bundleno = 7 (0x7), region = 111 }
 0x30d   :  { %871 = vsyncpa [#allocation3], 1 }
 0x30e   :  { %873 = vsyncpa [#allocation3 + $0x1], 1 }
 0x30f   :  { %874 = vsyncpa [#allocation6], 1 }
 0x310   :  { %875 = vsyncpa [#allocation9], 1 }
 0x311   :  { %876 = vsyncpa [#allocation4], 1 }
 0x312   :  { %878 = vsyncpa [#allocation4 + $0x1], 1 }

</bundles_post_ra>
